<compile_context>
chip_gen: v5e
topology: v5e:2x2
jax: 0.10.0
libtpu: 0.0.40
codegen_flags: <defaults>
</compile_context>

<pallas_src>
import jax
import jax.numpy as jnp
from jax.experimental import pallas as pl
from jax.experimental.pallas import tpu as pltpu


def actor_mlp_kernel(x_ref, w1_ref, b1_ref, w2_ref, b2_ref, w3_ref, b3_ref,
                     out_ref):
    """One batch tile of the fused 3-layer MLP (bf16 MXU, f32 elementwise)."""
    x = x_ref[...].astype(jnp.bfloat16)  # (TB, S) in-kernel cast, no HBM pass

    # layer 1: Linear(state_dim, 64) + ReLU   (MXU bf16 -> f32 acc, VPU max)
    h1 = jnp.dot(x, w1_ref[...], preferred_element_type=jnp.float32)
    h1 = jnp.maximum(h1 + b1_ref[...], 0.0)

    # layer 2: Linear(64, 64) + ReLU
    h2 = jnp.dot(h1.astype(jnp.bfloat16), w2_ref[...],
                 preferred_element_type=jnp.float32)
    h2 = jnp.maximum(h2 + b2_ref[...], 0.0)

    # layer 3: Linear(64, action_dim) + Tanh  (EUP transcendental, f32)
    h3 = jnp.dot(h2.astype(jnp.bfloat16), w3_ref[...],
                 preferred_element_type=jnp.float32)
    out_ref[...] = jnp.tanh(h3 + b3_ref[...]).astype(out_ref.dtype)


def prepare_params(params):
    """One-time prep: cast matmul operands to bf16; biases stay f32 (1, H)."""
    w1, b1, w2, b2, w3, b3 = params
    return (w1.astype(jnp.bfloat16), b1.astype(jnp.float32),
            w2.astype(jnp.bfloat16), b2.astype(jnp.float32),
            w3.astype(jnp.bfloat16), b3.astype(jnp.float32))


def actor_forward(state, prepared, *, max_tb=2048):
    """Batched policy forward: (B, state_dim) f32 -> (B, action_dim) f32."""
    w1b, b1, w2b, b2, w3b, b3 = prepared
    B, S = state.shape
    H1 = w1b.shape[1]
    H2 = w2b.shape[1]
    A = w3b.shape[1]

    # Batch tile: multiple of 8 sublanes, capped at max_tb.
    tb = min(max_tb, ((B + 7) // 8) * 8)
    # v7x: prefer >=2 grid steps so ("parallel",) shards across both TCs.
    if pl.cdiv(B, tb) < 2 and tb > 8:
        tb = max(8, (((tb // 2) + 7) // 8) * 8)
    grid = (pl.cdiv(B, tb),)
    # NOTE: the final block may extend past B; reads there are unspecified and
    # the corresponding output rows are dropped by Pallas on write-back.

    const2 = lambda i: (0, 0)  # weights/biases: same block every grid step

    flops = 2 * B * (S * H1 + H1 * H2 + H2 * A)
    bytes_accessed = (B * S * 4                                   # input (f32)
                      + (w1b.size + w2b.size + w3b.size) * 2      # bf16 weights
                      + (b1.size + b2.size + b3.size) * 4         # f32 biases
                      + B * A * 4)                                # output (f32)

    out = pl.pallas_call(
        actor_mlp_kernel,
        out_shape=jax.ShapeDtypeStruct((B, A), jnp.float32),
        grid=grid,
        in_specs=[
            pl.BlockSpec((tb, S), lambda i: (i, 0)),   # activation stream
            pl.BlockSpec((S, H1), const2),             # VMEM-resident weights
            pl.BlockSpec((1, H1), const2),
            pl.BlockSpec((H1, H2), const2),
            pl.BlockSpec((1, H2), const2),
            pl.BlockSpec((H2, A), const2),
            pl.BlockSpec((1, A), const2),
        ],
        out_specs=pl.BlockSpec((tb, A), lambda i: (i, 0)),
        compiler_params=pltpu.CompilerParams(
            dimension_semantics=("parallel",)),
        cost_estimate=pl.CostEstimate(
            flops=flops,
            transcendentals=B * A,
            bytes_accessed=bytes_accessed),
    )(state, w1b, b1, w2b, b2, w3b, b3)

    return out


def init_params(key, state_dim, action_dim):
    """Deterministic parameter init (same shapes as the nn.Module)."""
    k1, k2, k3, k4, k5, k6 = jax.random.split(key, 6)
    # Weights stored as (in, out) == transpose of PyTorch's (out, in).
    w1 = jax.random.normal(k1, (state_dim, 64), jnp.float32) * 0.1
    b1 = jax.random.normal(k2, (1, 64), jnp.float32) * 0.1
    w2 = jax.random.normal(k3, (64, 64), jnp.float32) * 0.1
    b2 = jax.random.normal(k4, (1, 64), jnp.float32) * 0.1
    w3 = jax.random.normal(k5, (64, action_dim), jnp.float32) * 0.1
    b3 = jax.random.normal(k6, (1, action_dim), jnp.float32) * 0.1
    return (w1, b1, w2, b2, w3, b3)


def actor_forward_ref(state, params):
    """Pure-JAX reference mirroring the kernel's bf16-matmul / f32-acc path."""
    w1, b1, w2, b2, w3, b3 = params
    bf = jnp.bfloat16
    f32 = jnp.float32
    h1 = jnp.maximum(
        jnp.dot(state.astype(bf), w1.astype(bf), preferred_element_type=f32) + b1, 0.0)
    h2 = jnp.maximum(
        jnp.dot(h1.astype(bf), w2.astype(bf), preferred_element_type=f32) + b2, 0.0)
    h3 = jnp.dot(h2.astype(bf), w3.astype(bf), preferred_element_type=f32) + b3
    return jnp.tanh(h3)


if __name__ == "__main__":
    # BipedalWalker-v3: state_dim = 24, action_dim = 4
    state_dim, action_dim = 24, 4

    # log_std parameter of the module (unused in forward(); kept for parity)
    log_std = jnp.full((action_dim,), -1.0, dtype=jnp.float32)
    # TODO(synk): act()/evaluate() (MultivariateNormal sample / log_prob /
    # entropy) are distribution ops outside the network forward; not kernelized.

    key = jax.random.PRNGKey(0)
    k_params, k_state = jax.random.split(key)
    params = init_params(k_params, state_dim, action_dim)
    prepared = prepare_params(params)  # one-time bf16 weight prep

    # Small even batch (single grid step)
    state = jax.random.normal(k_state, (8, state_dim), jnp.float32)
    out = jax.block_until_ready(actor_forward(state, prepared))
    ref = actor_forward_ref(state, params)
    assert out.shape == (8, action_dim)
    assert jnp.allclose(out, ref, atol=2e-3, rtol=2e-3)

    # Ragged batch (exercises the partial last block + >=2 grid steps path)
    state2 = jax.random.normal(jax.random.PRNGKey(1), (10, state_dim), jnp.float32)
    out2 = jax.block_until_ready(actor_forward(state2, prepared))
    ref2 = actor_forward_ref(state2, params)
    assert out2.shape == (10, action_dim)
    assert jnp.allclose(out2, ref2, atol=2e-3, rtol=2e-3)

    print("KERNEL_OK")
</pallas_src>

<mosaic_0001>
module attributes {stable_mosaic.version = 11 : i64} {
  func.func @actor_mlp_kernel(%arg0: i32, %arg1: memref<8x24xf32, #tpu.memory_space<vmem>>, %arg2: memref<24x64xbf16, #tpu.memory_space<vmem>>, %arg3: memref<1x64xf32, #tpu.memory_space<vmem>>, %arg4: memref<64x64xbf16, #tpu.memory_space<vmem>>, %arg5: memref<1x64xf32, #tpu.memory_space<vmem>>, %arg6: memref<64x4xbf16, #tpu.memory_space<vmem>>, %arg7: memref<1x4xf32, #tpu.memory_space<vmem>>, %arg8: memref<8x4xf32, #tpu.memory_space<vmem>>) attributes {dimension_semantics = [#tpu.dimension_semantics<parallel>], iteration_bounds = array<i64: 1>, scalar_prefetch = 0 : i64, scratch_operands = 0 : i64, tpu.core_type = #tpu.core_type<tc>, window_params = [{transform_indices = @transform_0, window_bounds = array<i64: 8, 24>}, {pipeline_mode = #tpu.pipeline_mode<synchronous>, transform_indices = @transform_1, window_bounds = array<i64: 24, 64>}, {pipeline_mode = #tpu.pipeline_mode<synchronous>, transform_indices = @transform_2, window_bounds = array<i64: 1, 64>}, {pipeline_mode = #tpu.pipeline_mode<synchronous>, transform_indices = @transform_3, window_bounds = array<i64: 64, 64>}, {pipeline_mode = #tpu.pipeline_mode<synchronous>, transform_indices = @transform_4, window_bounds = array<i64: 1, 64>}, {pipeline_mode = #tpu.pipeline_mode<synchronous>, transform_indices = @transform_5, window_bounds = array<i64: 64, 4>}, {pipeline_mode = #tpu.pipeline_mode<synchronous>, transform_indices = @transform_6, window_bounds = array<i64: 1, 4>}, {transform_indices = @transform_7, window_bounds = array<i64: 8, 4>}]} {
    %c0 = arith.constant 0 : index
    %c0_0 = arith.constant 0 : index
    %0 = vector.load %arg1[%c0, %c0_0] : memref<8x24xf32, #tpu.memory_space<vmem>>, vector<8x24xf32>
    %1 = arith.truncf %0 : vector<8x24xf32> to vector<8x24xbf16>
    %c0_1 = arith.constant 0 : index
    %c0_2 = arith.constant 0 : index
    %2 = vector.load %arg2[%c0_1, %c0_2] : memref<24x64xbf16, #tpu.memory_space<vmem>>, vector<24x64xbf16>
    %cst = arith.constant dense<0.000000e+00> : vector<8x64xf32>
    %3 = tpu.matmul %1, %2, %cst {dimension_numbers = #tpu.dot_dimension_numbers<[1], [0], [0], [1], [0, 0, 1, 1], [], []>} : vector<8x24xbf16>, vector<24x64xbf16>, vector<8x64xf32> -> vector<8x64xf32>
    %c0_3 = arith.constant 0 : index
    %c0_4 = arith.constant 0 : index
    %4 = vector.load %arg3[%c0_3, %c0_4] : memref<1x64xf32, #tpu.memory_space<vmem>>, vector<1x64xf32>
    %5 = vector.broadcast %4 : vector<1x64xf32> to vector<8x64xf32>
    %6 = arith.addf %3, %5 : vector<8x64xf32>
    %cst_5 = arith.constant 0.000000e+00 : f32
    %7 = vector.broadcast %cst_5 : f32 to vector<8x64xf32>
    %8 = arith.maximumf %6, %7 : vector<8x64xf32>
    %9 = arith.truncf %8 : vector<8x64xf32> to vector<8x64xbf16>
    %c0_6 = arith.constant 0 : index
    %c0_7 = arith.constant 0 : index
    %10 = vector.load %arg4[%c0_6, %c0_7] : memref<64x64xbf16, #tpu.memory_space<vmem>>, vector<64x64xbf16>
    %cst_8 = arith.constant dense<0.000000e+00> : vector<8x64xf32>
    %11 = tpu.matmul %9, %10, %cst_8 {dimension_numbers = #tpu.dot_dimension_numbers<[1], [0], [0], [1], [0, 0, 1, 1], [], []>} : vector<8x64xbf16>, vector<64x64xbf16>, vector<8x64xf32> -> vector<8x64xf32>
    %c0_9 = arith.constant 0 : index
    %c0_10 = arith.constant 0 : index
    %12 = vector.load %arg5[%c0_9, %c0_10] : memref<1x64xf32, #tpu.memory_space<vmem>>, vector<1x64xf32>
    %13 = vector.broadcast %12 : vector<1x64xf32> to vector<8x64xf32>
    %14 = arith.addf %11, %13 : vector<8x64xf32>
    %cst_11 = arith.constant 0.000000e+00 : f32
    %15 = vector.broadcast %cst_11 : f32 to vector<8x64xf32>
    %16 = arith.maximumf %14, %15 : vector<8x64xf32>
    %17 = arith.truncf %16 : vector<8x64xf32> to vector<8x64xbf16>
    %c0_12 = arith.constant 0 : index
    %c0_13 = arith.constant 0 : index
    %18 = vector.load %arg6[%c0_12, %c0_13] : memref<64x4xbf16, #tpu.memory_space<vmem>>, vector<64x4xbf16>
    %cst_14 = arith.constant dense<0.000000e+00> : vector<8x4xf32>
    %19 = tpu.matmul %17, %18, %cst_14 {dimension_numbers = #tpu.dot_dimension_numbers<[1], [0], [0], [1], [0, 0, 1, 1], [], []>} : vector<8x64xbf16>, vector<64x4xbf16>, vector<8x4xf32> -> vector<8x4xf32>
    %c0_15 = arith.constant 0 : index
    %c0_16 = arith.constant 0 : index
    %20 = vector.load %arg7[%c0_15, %c0_16] : memref<1x4xf32, #tpu.memory_space<vmem>>, vector<1x4xf32>
    %21 = vector.broadcast %20 : vector<1x4xf32> to vector<8x4xf32>
    %22 = arith.addf %19, %21 : vector<8x4xf32>
    %23 = math.tanh %22 : vector<8x4xf32>
    %c0_17 = arith.constant 0 : index
    %c0_18 = arith.constant 0 : index
    %24 = vector.load %arg8[%c0_17, %c0_18] : memref<8x4xf32, #tpu.memory_space<vmem>>, vector<8x4xf32>
    tpu.vector_store %arg8[%c0_17, %c0_18], %23 {strides = array<i32>} : memref<8x4xf32, #tpu.memory_space<vmem>>, vector<8x4xf32>,
    return
  }
  func.func @transform_0(%arg0: i32) -> (i32, i32) {
    %c0_i32 = arith.constant 0 : i32
    %c0_i32_0 = arith.constant 0 : i32
    return %arg0, %c0_i32 : i32, i32
  }
  func.func @transform_1(%arg0: i32) -> (i32, i32) {
    %c0_i32 = arith.constant 0 : i32
    %c0_i32_0 = arith.constant 0 : i32
    %c0_i32_1 = arith.constant 0 : i32
    return %c0_i32, %c0_i32_0 : i32, i32
  }
  func.func @transform_2(%arg0: i32) -> (i32, i32) {
    %c0_i32 = arith.constant 0 : i32
    %c0_i32_0 = arith.constant 0 : i32
    %c0_i32_1 = arith.constant 0 : i32
    return %c0_i32, %c0_i32_0 : i32, i32
  }
  func.func @transform_3(%arg0: i32) -> (i32, i32) {
    %c0_i32 = arith.constant 0 : i32
    %c0_i32_0 = arith.constant 0 : i32
    %c0_i32_1 = arith.constant 0 : i32
    return %c0_i32, %c0_i32_0 : i32, i32
  }
  func.func @transform_4(%arg0: i32) -> (i32, i32) {
    %c0_i32 = arith.constant 0 : i32
    %c0_i32_0 = arith.constant 0 : i32
    %c0_i32_1 = arith.constant 0 : i32
    return %c0_i32, %c0_i32_0 : i32, i32
  }
  func.func @transform_5(%arg0: i32) -> (i32, i32) {
    %c0_i32 = arith.constant 0 : i32
    %c0_i32_0 = arith.constant 0 : i32
    %c0_i32_1 = arith.constant 0 : i32
    return %c0_i32, %c0_i32_0 : i32, i32
  }
  func.func @transform_6(%arg0: i32) -> (i32, i32) {
    %c0_i32 = arith.constant 0 : i32
    %c0_i32_0 = arith.constant 0 : i32
    %c0_i32_1 = arith.constant 0 : i32
    return %c0_i32, %c0_i32_0 : i32, i32
  }
  func.func @transform_7(%arg0: i32) -> (i32, i32) {
    %c0_i32 = arith.constant 0 : i32
    %c0_i32_0 = arith.constant 0 : i32
    return %arg0, %c0_i32 : i32, i32
  }
}

</mosaic_0001>

<bundles_post_ra>
// kernel: tpu_custom_call.1
= control target key start
LH: loop header
LB: loop body
LE: loop exit
PB: predicated region body
PF: predicated region fallthrough
CT: control target
= control target key end

     0   :  { %12 = vsyncpa [#allocation3], 0  ;;  %s409_s0 = inlined_call_operand.hbm [shape: f32[8,24], index: 0, kind: input, shape index: {}]   ;;  %s410_s1 = inlined_call_operand.hbm [shape: bf16[24,64], index: 1, kind: input, shape index: {}]   ;;  %s411_s2 = inlined_call_operand.vmem [shape: f32[1,64], index: 2, kind: input, shape index: {}]   ;;  %s412_s3 = inlined_call_operand.vmem [shape: bf16[64,64], index: 3, kind: input, shape index: {}]   ;;  %s413_s4 = inlined_call_operand.vmem [shape: f32[1,64], index: 4, kind: input, shape index: {}]   ;;  %s414_s5 = inlined_call_operand.vmem [shape: bf16[64,4], index: 5, kind: input, shape index: {}]   ;;  %s415_s6 = inlined_call_operand.vmem [shape: f32[1,4], index: 6, kind: input, shape index: {}]   ;;  %s416_s7 = inlined_call_operand.vmem [shape: f32[8,4], index: 7, kind: output, shape index: {}]  }
   0x1   :  { %s19_s26 = sshll.u32 %s409_s0, 4  ;;  %s20_s26 = int_to_ptr.hbm [resolvable:$true] %s19_s26 }
   0x2   :  { %13 = vsyncpa [#allocation5], 0  ;;  %s323_s27 = smov [#allocation2]   ;;  %s29_s8 = sshll.u32 %s410_s1, 4  ;;  %s30_s8 = int_to_ptr.hbm [resolvable:$true] %s29_s8 }
   0x3   :  { %s21_s28 = sshll.u32 %s323_s27, 4  ;;  %s324_s9 = smov [#allocation4]   ;;  %s22_s28 = int_to_ptr.vmem [resolvable:$true] %s21_s28 }
   0x4   :  { %24 = dma.hbm_to_vmem [thread:$0]  %s20_s26, 128, %s22_s28, [#allocation3]  }
   0x5   :  { %s31_s10 = sshll.u32 %s324_s9, 4  ;;  %s325_s11 = smov 64   ;;  %s32_s10 = int_to_ptr.vmem [resolvable:$true] %s31_s10 }
   0x6   :  { %s326_s12 = smov 4  }
   0x7   :  { %37 = dma.hbm_to_vmem [thread:$0]  %s30_s8, 192, %s32_s10, [#allocation5], %s325_s11, %s325_s11, %s326_s12  }
   0x8   :  { %319 = dma.done.wait [#allocation3], 128  }
   0x9   :  { %320 = vsyncadd [#allocation3], 4294967168 }
   0xa   :  { %321 = dma.done.wait [#allocation5], 192  }
   0xb   :  { %322 = vsyncadd [#allocation5], 4294967104  ;;  %v61_v0 = vld [vmem:[#allocation4 + $0x8] sm:$0xf]  ;;  %v257_v2 = vld [vmem:[%s412_s3 + $0x18] sm:$0xff]  ;;  %vm79_vm0 = vcmask 1043456  }
   0xc   :  { %v71_v1 = vunpack.c.l.b16 %v61_v0  ;;  %142 = vmatpush.bf16.msra.mxu1 %v257_v2  ;;  %v256_v4 = vld [vmem:[%s412_s3 + $0x10] sm:$0xff]  ;;  %v253_v6 = vld [vmem:[#allocation4] sm:$0xff]  ;;  %v57_v7 = vld [vmem:[#allocation2] sm:$0xff]  ;;  %vm75_vm1 = vcmask 195584   ;;  %vm134_vm2 = vcmask 523264   ;;  %vm206_vm3 = vcmask 31744  }
   0xd   :  { %v58_v8 = vpack.c.bf16 %v57_v7, %v57_v7  ;;  %v255_v9 = vld [vmem:[%s412_s3 + $0x8] sm:$0xff]  ;;  %v254_v10 = vld [vmem:[%s412_s3] sm:$0xff]  ;;  %v261_v11 = vld [vmem:[%s414_s5 + $0x18] sm:$0xff] }
   0xe   :  { %v73_v3 = vpack.c.b16 %v71_v1, %v71_v1  ;;  %196 = vmatpush.bf16.msra.mxu2 %v261_v11  ;;  %v260_v12 = vld [vmem:[%s414_s5 + $0x10] sm:$0xff]  ;;  %v266_v13 = vld [vmem:[%s411_s2] ss:$0 sm:$0xff]  ;;  %v259_v19 = vld [vmem:[%s414_s5 + $0x8] sm:$0xff] }
   0xf   :  { %v258_v20 = vld [vmem:[%s414_s5] sm:$0xff] }
  0x10   :  { %v81_v5 = vsel %vm79_vm0, %v73_v3, 0  ;;  %143 = vmatpush.bf16.msra.mxu1 %v256_v4  ;;  %v267_v21 = vld [vmem:[%s413_s4] ss:$0 sm:$0xff] }
  0x11   :  { %89 = vmatpush.bf16.msra.mxu0 %v81_v5  ;;  %v268_v27 = vld [vmem:[%s415_s6] ss:$0 sm:$0xff] }
  0x12   :  { %197 = vmatpush.bf16.msra.mxu2 %v260_v12 }
  0x14   :  { %144 = vmatpush.bf16.msra.mxu1 %v255_v9 }
  0x15   :  { %90 = vmatpush.bf16.msra.mxu0 %v253_v6 }
  0x16   :  { %198 = vmatpush.bf16.msra.mxu2 %v259_v19 }
  0x18   :  { %218 = vmatmul.msk.bf16.vlgmr.msra.gmra.mxu0 %vm75_vm1, %v58_v8  ;;  %145 = vmatpush.bf16.msra.mxu1 %v254_v10 }
  0x1a   :  { %199 = vmatpush.bf16.msra.mxu2 %v258_v20 }
  0x95   :  { %v92_v14 = vpop.f32.mrf.mxu0 }
  0x96   :  { %v93_v15 = vadd.f32 %v266_v13, %v92_v14 }
  0x98   :  { %v96_v16 = vmax.f32 %v93_v15, 0.0 }
  0x9a   :  { %v97_v17 = vpack.c.bf16 %v96_v16, %v96_v16 }
  0x9c   :  { %235 = vmatmul.msk.bf16.vlgmr.msra.gmra.mxu1 %vm134_vm2, %v97_v17 }
  0x9d   :  { %v94_v18 = vpop.f32.mrf.mxu0 }
 0x119   :  { %v147_v22 = vpop.f32.mrf.mxu1 }
 0x11a   :  { %v148_v23 = vadd.f32 %v267_v21, %v147_v22 }
 0x11c   :  { %v151_v24 = vmax.f32 %v148_v23, 0.0 }
 0x11e   :  { %v152_v25 = vpack.c.bf16 %v151_v24, %v151_v24 }
 0x120   :  { %252 = vmatmul.msk.bf16.vlgmr.msra.gmra.mxu2 %vm134_vm2, %v152_v25 }
 0x121   :  { %v149_v26 = vpop.f32.mrf.mxu1 }
 0x1a3   :  { %v201_v28 = vpop.f32.mrf.mxu2 }
 0x1a4   :  { %v202_v29 = vadd.f32 %v268_v27, %v201_v28 }
 0x1a6   :  { %269 = vtanh.f32 %v202_v29 }
 0x1ab   :  { %v203_v30 = vpop.f32.mrf.mxu2 }
 0x1ac   :  { %v270_v31 = vpop.eup %269 }
 0x1ad   :  { %207 = vst.msk [vmem:[%s416_s7] sm:$0xff] %vm206_vm3, %v270_v31 }
 0x1ae   :  { %212 = vsyncpa [#allocation3], 1 }
 0x1af   :  { %213 = vsyncpa [#allocation5], 1 }

</bundles_post_ra>
